<compile_context>
chip_gen: v6e
topology: v6e:2x2x1
jax: 0.10.0
libtpu: 0.0.40
codegen_flags: <defaults>
</compile_context>

<pallas_src>
import functools
import numpy as np
import jax
import jax.numpy as jnp
from jax.experimental import pallas as pl
from jax.experimental.pallas import tpu as pltpu

SNR_DB = 5.0
SNR_WATT = 10.0 ** (SNR_DB / 10.0)
POWER_GAIN = float((SNR_WATT * 1e-6 / 2.0) ** 0.5)

_LANES = 128
_SUBLANES = 8
_TARGET_BLOCK_BYTES = 512 * 1024      # ~512 KiB per x block (near HBM roofline)
_MAX_FUSED_LANE_DIM = 16384           # keep fused-path blocks bounded in VMEM
_VMEM_LIMIT_BYTES = 32 * 1024 * 1024  # explicit; safe on v5e/v6e/v7x


def _round_up(a, m):
    return ((a + m - 1) // m) * m


def _cdiv(a, b):
    return (a + b - 1) // b


def _plan_tiles(B, rows, lane_width):
    """Pick (TB, TR, T, GB): sublane-dense row tile TR (T feature tiles), batch
    tile TB (GB batch tiles), targeting ~512 KiB x-blocks and >= 2 grid steps
    (v7x two-TC / megacore friendly) whenever the data can be split."""
    row_bytes = lane_width * 4
    tr_cap = max(_SUBLANES,
                 (_TARGET_BLOCK_BYTES // row_bytes) // _SUBLANES * _SUBLANES)
    if rows <= tr_cap:
        T = 1
        TR = _round_up(rows, _SUBLANES)
    else:
        T = _cdiv(rows, tr_cap)
        TR = _round_up(_cdiv(rows, T), _SUBLANES)
    TB = max(1, min(B, _TARGET_BLOCK_BYTES // (TR * row_bytes)))
    GB = _cdiv(B, TB)
    # Ensure both TensorCores get work on v7x (and enable pipelining) when possible.
    if T * GB < 2:
        if B >= 2:
            TB = _cdiv(B, 2)
            GB = _cdiv(B, TB)
        elif TR > _SUBLANES:
            T = 2
            TR = _round_up(_cdiv(rows, 2), _SUBLANES)
    return TB, TR, T, GB


def _split_kernel(x_ref, nr_ref, ni_ref, real_ref, imag_ref):
    # x_ref: (TB, TR, 128); nr_ref/ni_ref: (1, TR, 128) broadcast over TB.
    x = x_ref[...]
    phase = (2.0 * jnp.pi) * x
    # phase > 0  <=>  x > 0 ; select the amplitude directly.
    amp = jnp.where(x > 0, jnp.float32(POWER_GAIN), jnp.float32(0.0))
    # TODO(synk): if v7x profiling shows VALU-bound, replace jnp.sin/cos with a
    # period-1 range reduction (x - round(x)) + short minimax polynomials.
    real_ref[...] = amp * jnp.cos(phase) + nr_ref[...]
    imag_ref[...] = amp * jnp.sin(phase) + ni_ref[...]


def _fused_kernel(w, x_ref, nr_ref, ni_ref, out_ref):
    # x_ref: (TB, TM, W); out_ref: (TB, TM, 2W); W % 128 == 0 so both halves are
    # lane-aligned -> unmasked stores, no wrapper concat needed.
    x = x_ref[...]
    phase = (2.0 * jnp.pi) * x
    amp = jnp.where(x > 0, jnp.float32(POWER_GAIN), jnp.float32(0.0))
    out_ref[:, :, pl.ds(0, w)] = amp * jnp.cos(phase) + nr_ref[...]
    out_ref[:, :, pl.ds(w, w)] = amp * jnp.sin(phase) + ni_ref[...]


def _run_split(x2, nr, ni, orig_shape, B, N):
    rows_raw = _cdiv(N, _LANES)
    TB, TR, T, GB = _plan_tiles(B, rows_raw, _LANES)
    R = T * TR
    B_pad = GB * TB
    N_pad = R * _LANES

    pb, pf = B_pad - B, N_pad - N
    if pb or pf:
        x2 = jnp.pad(x2, ((0, pb), (0, pf)))
    if pf:
        nr = jnp.pad(nr, ((0, 0), (0, pf)))
        ni = jnp.pad(ni, ((0, 0), (0, pf)))

    x3 = x2.reshape(B_pad, R, _LANES)
    nr3 = nr.reshape(1, R, _LANES)
    ni3 = ni.reshape(1, R, _LANES)

    cost = pl.CostEstimate(
        flops=8 * B_pad * N_pad,
        transcendentals=2 * B_pad * N_pad,
        bytes_accessed=4 * (3 * B_pad * N_pad + 2 * N_pad),
    )

    real_o, imag_o = pl.pallas_call(
        _split_kernel,
        out_shape=(
            jax.ShapeDtypeStruct((B_pad, R, _LANES), jnp.float32),
            jax.ShapeDtypeStruct((B_pad, R, _LANES), jnp.float32),
        ),
        grid_spec=pltpu.PrefetchScalarGridSpec(
            num_scalar_prefetch=0,
            # batch innermost: broadcast nr/ni keep the same block index across
            # consecutive steps, so their re-DMA is skipped.
            grid=(T, GB),
            in_specs=[
                pl.BlockSpec((TB, TR, _LANES), lambda t, b: (b, t, 0)),  # x
                pl.BlockSpec((1, TR, _LANES), lambda t, b: (0, t, 0)),   # nr (bcast)
                pl.BlockSpec((1, TR, _LANES), lambda t, b: (0, t, 0)),   # ni (bcast)
            ],
            out_specs=[
                pl.BlockSpec((TB, TR, _LANES), lambda t, b: (b, t, 0)),  # real
                pl.BlockSpec((TB, TR, _LANES), lambda t, b: (b, t, 0)),  # imag
            ],
        ),
        compiler_params=pltpu.CompilerParams(
            dimension_semantics=("parallel", "parallel"),
            vmem_limit_bytes=_VMEM_LIMIT_BYTES,
        ),
        cost_estimate=cost,
    )(x3, nr3, ni3)

    # Wrapper-side interleave to reproduce torch.cat((real, imag), dim=-1)
    # (only needed when the last dim is not lane-aligned); fused under jit.
    real = real_o.reshape(B_pad, N_pad)[:B, :N].reshape(orig_shape)
    imag = imag_o.reshape(B_pad, N_pad)[:B, :N].reshape(orig_shape)
    return jnp.concatenate((real, imag), axis=-1)


def _run_fused(x2, nr, ni, orig_shape, B, N, W):
    M = N // W
    TB, TM, T, GB = _plan_tiles(B, M, W)
    M_pad = T * TM
    B_pad = GB * TB

    x3 = x2.reshape(B, M, W)
    nr3 = nr.reshape(1, M, W)
    ni3 = ni.reshape(1, M, W)
    pb, pm = B_pad - B, M_pad - M
    if pb or pm:
        x3 = jnp.pad(x3, ((0, pb), (0, pm), (0, 0)))
    if pm:
        nr3 = jnp.pad(nr3, ((0, 0), (0, pm), (0, 0)))
        ni3 = jnp.pad(ni3, ((0, 0), (0, pm), (0, 0)))

    cost = pl.CostEstimate(
        flops=8 * B_pad * M_pad * W,
        transcendentals=2 * B_pad * M_pad * W,
        bytes_accessed=4 * (3 * B_pad * M_pad * W + 2 * M_pad * W),
    )

    out = pl.pallas_call(
        functools.partial(_fused_kernel, W),
        out_shape=jax.ShapeDtypeStruct((B_pad, M_pad, 2 * W), jnp.float32),
        grid_spec=pltpu.PrefetchScalarGridSpec(
            num_scalar_prefetch=0,
            grid=(T, GB),
            in_specs=[
                pl.BlockSpec((TB, TM, W), lambda t, b: (b, t, 0)),   # x
                pl.BlockSpec((1, TM, W), lambda t, b: (0, t, 0)),    # nr (bcast)
                pl.BlockSpec((1, TM, W), lambda t, b: (0, t, 0)),    # ni (bcast)
            ],
            out_specs=pl.BlockSpec((TB, TM, 2 * W), lambda t, b: (b, t, 0)),
        ),
        compiler_params=pltpu.CompilerParams(
            dimension_semantics=("parallel", "parallel"),
            vmem_limit_bytes=_VMEM_LIMIT_BYTES,
        ),
        cost_estimate=cost,
    )(x3, nr3, ni3)

    out = out[:B, :M, :]
    return out.reshape(orig_shape[:-1] + (2 * W,))


def _wireless_ch_impl(x, h_real, h_imag, n):
    """x: (B, ...); h_real/h_imag/n: (1, ...) broadcast over batch.
    Returns (B, ..., 2*last_dim) float32 = concat(real, imag) along last axis."""
    orig_shape = x.shape
    B = orig_shape[0]
    W = orig_shape[-1]
    N = int(np.prod(orig_shape[1:]))

    x2 = x.reshape(B, N).astype(jnp.float32)
    hr = h_real.reshape(1, N).astype(jnp.float32)
    hi = h_imag.reshape(1, N).astype(jnp.float32)
    n2 = n.reshape(1, N).astype(jnp.float32)

    # Hoist the batch-invariant noise term n * conj(h) / |h|^2 (computed once,
    # BEFORE padding, so there is no 0/0 in padded lanes).
    inv_h2 = 1.0 / (hr * hr + hi * hi)
    nr = n2 * hr * inv_h2
    ni = -(n2 * hi * inv_h2)

    if W % _LANES == 0 and W <= _MAX_FUSED_LANE_DIM:
        # Lane-aligned last dim: emit the concatenated layout directly.
        return _run_fused(x2, nr, ni, orig_shape, B, N, W)
    return _run_split(x2, nr, ni, orig_shape, B, N)


# Jit the wrapper so the pad / slice / reshape / concat epilogue fuses into a
# single XLA program around the pallas_call (minimizes extra HBM passes).
wireless_ch = jax.jit(_wireless_ch_impl)


def _reference(x, h_real, h_imag, n):
    # Pure-JAX reference mirroring the torch code with explicit complex math.
    phase = 2.0 * jnp.pi * x
    carrier = jnp.exp(1j * phase.astype(jnp.complex64))
    h = (h_real + 1j * h_imag).astype(jnp.complex64)
    mask = (phase > 0).astype(jnp.float32)
    xc = POWER_GAIN * carrier * mask + n * jnp.conj(h) / jnp.abs(h) ** 2
    return jnp.concatenate((jnp.real(xc), jnp.imag(xc)), axis=-1).astype(jnp.float32)


if __name__ == "__main__":
    key = jax.random.PRNGKey(0)
    k_x, k_hr, k_hi, k_n = jax.random.split(key, 4)

    # Primary test: module-like shape (B, C, H, W) with W < 128 -> split path.
    B, C, H, W = 2, 4, 16, 16
    x = jax.random.normal(k_x, (B, C, H, W), dtype=jnp.float32)
    # torch.randn(..., dtype=cfloat): real & imag parts each ~ N(0, 1/2)
    h_real = jax.random.normal(k_hr, (1, C, H, W), dtype=jnp.float32) * (0.5 ** 0.5)
    h_imag = jax.random.normal(k_hi, (1, C, H, W), dtype=jnp.float32) * (0.5 ** 0.5)
    n = jax.random.normal(k_n, (1, C, H, W), dtype=jnp.float32) * 0.001

    out = wireless_ch(x, h_real, h_imag, n)
    jax.block_until_ready(out)
    assert out.shape == (B, C, H, 2 * W), out.shape
    ref = _reference(x, h_real, h_imag, n)
    np.testing.assert_allclose(np.asarray(out), np.asarray(ref), rtol=1e-5, atol=1e-6)

    # Secondary check: lane-aligned last dim (W % 128 == 0) exercises the fused
    # single-output path (no wrapper concat) plus batch/row padding.
    B2, S2, W2 = 3, 9, 256
    kx2, khr2, khi2, kn2 = jax.random.split(jax.random.PRNGKey(1), 4)
    x2 = jax.random.normal(kx2, (B2, S2, W2), dtype=jnp.float32)
    hr2 = jax.random.normal(khr2, (1, S2, W2), dtype=jnp.float32) * (0.5 ** 0.5)
    hi2 = jax.random.normal(khi2, (1, S2, W2), dtype=jnp.float32) * (0.5 ** 0.5)
    n2 = jax.random.normal(kn2, (1, S2, W2), dtype=jnp.float32) * 0.001
    out2 = wireless_ch(x2, hr2, hi2, n2)
    jax.block_until_ready(out2)
    assert out2.shape == (B2, S2, 2 * W2), out2.shape
    ref2 = _reference(x2, hr2, hi2, n2)
    np.testing.assert_allclose(np.asarray(out2), np.asarray(ref2), rtol=1e-5, atol=1e-6)

    print("KERNEL_OK")
</pallas_src>

<mosaic_0001>
module attributes {stable_mosaic.version = 11 : i64} {
  func.func @_split_kernel(%arg0: i32, %arg1: i32, %arg2: memref<1x8x128xf32, #tpu.memory_space<vmem>>, %arg3: memref<1x8x128xf32, #tpu.memory_space<vmem>>, %arg4: memref<1x8x128xf32, #tpu.memory_space<vmem>>, %arg5: memref<1x8x128xf32, #tpu.memory_space<vmem>>, %arg6: memref<1x8x128xf32, #tpu.memory_space<vmem>>) attributes {dimension_semantics = [#tpu.dimension_semantics<parallel>, #tpu.dimension_semantics<parallel>], iteration_bounds = array<i64: 1, 2>, scalar_prefetch = 0 : i64, scratch_operands = 0 : i64, tpu.core_type = #tpu.core_type<tc>, window_params = [{transform_indices = @transform_0, window_bounds = array<i64: 1, 8, 128>}, {transform_indices = @transform_1, window_bounds = array<i64: 1, 8, 128>}, {transform_indices = @transform_2, window_bounds = array<i64: 1, 8, 128>}, {transform_indices = @transform_3, window_bounds = array<i64: 1, 8, 128>}, {transform_indices = @transform_4, window_bounds = array<i64: 1, 8, 128>}]} {
    %c0 = arith.constant 0 : index
    %c0_0 = arith.constant 0 : index
    %c0_1 = arith.constant 0 : index
    %0 = vector.load %arg2[%c0, %c0_0, %c0_1] : memref<1x8x128xf32, #tpu.memory_space<vmem>>, vector<1x8x128xf32>
    %cst = arith.constant 6.28318548 : f32
    %1 = vector.broadcast %cst : f32 to vector<1x8x128xf32>
    %2 = arith.mulf %1, %0 : vector<1x8x128xf32>
    %cst_2 = arith.constant 0.000000e+00 : f32
    %3 = vector.broadcast %cst_2 : f32 to vector<1x8x128xf32>
    %4 = arith.cmpf ogt, %0, %3 : vector<1x8x128xf32>
    %cst_3 = arith.constant 0.00125743344 : f32
    %cst_4 = arith.constant 0.000000e+00 : f32
    %5 = vector.broadcast %cst_3 : f32 to vector<1x8x128xf32>
    %6 = vector.broadcast %cst_4 : f32 to vector<1x8x128xf32>
    %7 = arith.select %4, %5, %6 : vector<1x8x128xi1>, vector<1x8x128xf32>
    %8 = math.cos %2 : vector<1x8x128xf32>
    %9 = arith.mulf %7, %8 : vector<1x8x128xf32>
    %c0_5 = arith.constant 0 : index
    %c0_6 = arith.constant 0 : index
    %c0_7 = arith.constant 0 : index
    %10 = vector.load %arg3[%c0_5, %c0_6, %c0_7] : memref<1x8x128xf32, #tpu.memory_space<vmem>>, vector<1x8x128xf32>
    %11 = arith.addf %9, %10 : vector<1x8x128xf32>
    %c0_8 = arith.constant 0 : index
    %c0_9 = arith.constant 0 : index
    %c0_10 = arith.constant 0 : index
    %12 = vector.load %arg5[%c0_8, %c0_9, %c0_10] : memref<1x8x128xf32, #tpu.memory_space<vmem>>, vector<1x8x128xf32>
    tpu.vector_store %arg5[%c0_8, %c0_9, %c0_10], %11 {strides = array<i32>} : memref<1x8x128xf32, #tpu.memory_space<vmem>>, vector<1x8x128xf32>,
    %13 = math.sin %2 : vector<1x8x128xf32>
    %14 = arith.mulf %7, %13 : vector<1x8x128xf32>
    %c0_11 = arith.constant 0 : index
    %c0_12 = arith.constant 0 : index
    %c0_13 = arith.constant 0 : index
    %15 = vector.load %arg4[%c0_11, %c0_12, %c0_13] : memref<1x8x128xf32, #tpu.memory_space<vmem>>, vector<1x8x128xf32>
    %16 = arith.addf %14, %15 : vector<1x8x128xf32>
    %c0_14 = arith.constant 0 : index
    %c0_15 = arith.constant 0 : index
    %c0_16 = arith.constant 0 : index
    %17 = vector.load %arg6[%c0_14, %c0_15, %c0_16] : memref<1x8x128xf32, #tpu.memory_space<vmem>>, vector<1x8x128xf32>
    tpu.vector_store %arg6[%c0_14, %c0_15, %c0_16], %16 {strides = array<i32>} : memref<1x8x128xf32, #tpu.memory_space<vmem>>, vector<1x8x128xf32>,
    return
  }
  func.func @transform_0(%arg0: i32, %arg1: i32) -> (i32, i32, i32) {
    %c0_i32 = arith.constant 0 : i32
    %c0_i32_0 = arith.constant 0 : i32
    return %arg1, %arg0, %c0_i32 : i32, i32, i32
  }
  func.func @transform_1(%arg0: i32, %arg1: i32) -> (i32, i32, i32) {
    %c0_i32 = arith.constant 0 : i32
    %c0_i32_0 = arith.constant 0 : i32
    %c0_i32_1 = arith.constant 0 : i32
    return %c0_i32, %arg0, %c0_i32_0 : i32, i32, i32
  }
  func.func @transform_2(%arg0: i32, %arg1: i32) -> (i32, i32, i32) {
    %c0_i32 = arith.constant 0 : i32
    %c0_i32_0 = arith.constant 0 : i32
    %c0_i32_1 = arith.constant 0 : i32
    return %c0_i32, %arg0, %c0_i32_0 : i32, i32, i32
  }
  func.func @transform_3(%arg0: i32, %arg1: i32) -> (i32, i32, i32) {
    %c0_i32 = arith.constant 0 : i32
    %c0_i32_0 = arith.constant 0 : i32
    return %arg1, %arg0, %c0_i32 : i32, i32, i32
  }
  func.func @transform_4(%arg0: i32, %arg1: i32) -> (i32, i32, i32) {
    %c0_i32 = arith.constant 0 : i32
    %c0_i32_0 = arith.constant 0 : i32
    return %arg1, %arg0, %c0_i32 : i32, i32, i32
  }
}

</mosaic_0001>

<bundles_post_ra>
// kernel: _wireless_ch_impl.1
= control target key start
LH: loop header
LB: loop body
LE: loop exit
PB: predicated region body
PF: predicated region fallthrough
CT: control target
= control target key end

     0   :  { %s757_s15 = smov 0   ;;  %s759_s16 = smov 0   ;;  %s829_s0 = inlined_call_operand.vmem [shape: f32[2,8,128], index: 0, kind: input, shape index: {}]   ;;  %s830_s1 = inlined_call_operand.vmem [shape: f32[1,8,128], index: 1, kind: input, shape index: {}]   ;;  %s831_s2 = inlined_call_operand.vmem [shape: f32[1,8,128], index: 2, kind: input, shape index: {}]   ;;  %s832_s3 = inlined_call_operand.vmem [shape: f32[2,8,128], index: 3, kind: output, shape index: {0}]   ;;  %s833_s4 = inlined_call_operand.vmem [shape: f32[2,8,128], index: 4, kind: output, shape index: {1}]  }
   0x1   :  { %s761_s17 = smov 0  }
   0x2 LB: > { %s24_s18 = sadd.s32 1, %s719_s16  ;;  %p648_p0 = scmp.ge.s32.totalorder %s723_s17, 1  ;;  %s723_s17 = sphi %s761_s17, %s15_s17   ;;  %s719_s16 = sphi %s759_s16, %s835_s16   ;;  %s715_s15 = sphi %s757_s15, %s834_s15  }
   0x3   : > { %p25_p1 = scmp.ge.s32.totalorder %s24_s18, 2  ;;  %p203_p2 = scmp.lt.s32.totalorder %s723_s17, 3 }
   0x5   : > { %s837_s18 = smov (%p25_p1, %s24_s18), 0  ;;  %p204_p3 = pnand %p648_p0, %p203_p2 }
   0x6   : > { %p248_p4 = scmp.lt.s32.totalorder (!%p204_p3), %s715_s15, 1 }
   0x7   : > { %207 = sbr.rel (%p204_p3) target bundleno = 106 (0x6a), region = 32 }
   0xc   : > { %s839_s15 = smov (!%p248_p4, %s715_s15), 1  ;;  %v725_v13 = vmov 683565275   ;;  %v726_v15 = vmov 2475754826  }
   0xd   : > { %s775_s19 = sshll.u32 %s839_s15, 3  ;;  %v727_v17 = vmov 2131351028   ;;  %v728_v19 = vmov 2102212464  }
   0xe   : > { %s254_s22 = scalar_lea.vmem %s829_s0, %s775_s19  ;;  %v729_v21 = vmov 920167782   ;;  %v730_v28 = vmov 1326507024   ;;  %s269_s29 = scalar_lea.vmem %s832_s3, %s775_s19 }
   0xf   : > { %v781_v0 = vld [vmem:[%s254_s22] sm:$0xff]  ;;  %s276_s6 = scalar_lea.vmem %s833_s4, %s775_s19 }
  0x10   : > { %v784_v1 = vmul.f32 6.2831855, %v781_v0  ;;  %vm279_vm11 = vcmp.gt.f32.partialorder %v781_v0, 0.0  ;;  %v385_v0 = vld [vmem:[%s830_s1] sm:$0xff] }
  0x12   : > { %v284_v2 = vand.u32 2139095040, %v784_v1  ;;  %v281_v4 = vand.u32 2147483647, %v784_v1  ;;  %vm283_vm7 = vcmp.lt.s32.totalorder %v784_v1, 0 }
  0x14   : > { %v285_v3 = vshrl.u32 %v284_v2, 23  ;;  %v288_v7 = vand.u32 8388607, %v281_v4  ;;  %vm282_vm8 = vcmp.le.f32.partialorder %v281_v4, 0.7853982 }
  0x16   : > { %v652_v5 = vadd.s32 4294967169, %v285_v3  ;;  %v289_v10 = vor.u32 8388608, %v288_v7 }
  0x18   : > { %v291_v6 = vadd.s32 1, %v652_v5  ;;  %v329_v30 = vshll.u32 %v289_v10, 8 }
  0x1a   : > { %vm292_vm0 = vcmp.gt.s32.totalorder %v291_v6, 0 }
  0x1b   : > { %v293_v8 = vsel %vm292_vm0, %v291_v6, 0  ;;  %vm373_vm0 = vweird.f32 %v784_v1 }
  0x1c   : > { %v295_v9 = vand.u32 31, %v293_v8  ;;  %v294_v11 = vshrl.u32 %v293_v8, 5 }
  0x1e   : > { %v296_v12 = vsub.s32 32, %v295_v9  ;;  %v298_v14 = vshll.u32 %v725_v13, %v295_v9  ;;  %v301_v16 = vshll.u32 %v726_v15, %v295_v9  ;;  %v304_v18 = vshll.u32 %v727_v17, %v295_v9 }
  0x1f   : > { %v307_v20 = vshll.u32 %v728_v19, %v295_v9  ;;  %v310_v22 = vshll.u32 %v729_v21, %v295_v9  ;;  %vm313_vm1 = vcmp.lt.s32.totalorder %v294_v11, 1  ;;  %vm316_vm2 = vcmp.lt.s32.totalorder %v294_v11, 4 }
  0x20   : > { %v297_v23 = vshrl.u32 %v725_v13, %v296_v12  ;;  %v299_v24 = vshrl.u32 %v726_v15, %v296_v12  ;;  %v302_v25 = vshrl.u32 %v727_v17, %v296_v12  ;;  %v305_v26 = vshrl.u32 %v728_v19, %v296_v12 }
  0x21   : > { %v308_v27 = vshrl.u32 %v729_v21, %v296_v12  ;;  %v311_v29 = vshrl.u32 %v730_v28, %v296_v12  ;;  %vm314_vm3 = vcmp.lt.s32.totalorder %v294_v11, 2  ;;  %vm315_vm4 = vcmp.lt.s32.totalorder %v294_v11, 3 }
  0x22   : > { %v300_v31 = vor.u32 %v299_v24, %v298_v14  ;;  %v303_v32 = vor.u32 %v302_v25, %v301_v16  ;;  %v306_v33 = vor.u32 %v305_v26, %v304_v18 }
  0x23   : > { %v309_v34 = vor.u32 %v308_v27, %v307_v20  ;;  %v312_v35 = vor.u32 %v311_v29, %v310_v22 }
  0x24   : > { %v317_v36 = vsel %vm313_vm1, %v297_v23, %v300_v31  ;;  %v318_v37 = vsel %vm316_vm2, %v306_v33, 2102212464  ;;  %v321_v38 = vsel %vm313_vm1, %v300_v31, %v303_v32  ;;  %v325_v39 = vsel %vm313_vm1, %v303_v32, %v306_v33 }
  0x25   : > { %v319_v40 = vsel %vm315_vm4, %v303_v32, %v318_v37  ;;  %v322_v41 = vsel %vm316_vm2, %v309_v34, 920167782  ;;  %v326_v42 = vsel %vm316_vm2, %v312_v35, 1326507024 }
  0x26   : > { %v323_v43 = vsel %vm315_vm4, %v306_v33, %v322_v41  ;;  %v327_v44 = vsel %vm315_vm4, %v309_v34, %v326_v42  ;;  %v320_v45 = vsel %vm314_vm3, %v317_v36, %v319_v40 }
  0x27   : > { %v324_v46 = vsel %vm314_vm3, %v321_v38, %v323_v43  ;;  %v328_v47 = vsel %vm314_vm3, %v325_v39, %v327_v44  ;;  %v336_v52 = vmul.u32 %v329_v30, %v320_v45  ;;  %v493_v38 = vld [vmem:[%s831_s2] sm:$0xff] }
  0x28   : > { %v790_v48 = vmul.u32.u64.low %v329_v30, %v328_v47  ;;  %v791_v49 = vmul.u32.u64.high %v329_v30, %v328_v47, %v790_v48  ;;  %v793_v50 = vmul.u32.u64.low %v329_v30, %v324_v46  ;;  %v794_v51 = vmul.u32.u64.high %v329_v30, %v324_v46, %v793_v50 }
  0x29   : > { %v731_v30 = vmov 0.0  }
  0x2a   : > { %vm338_vm5 = vc.u32 %v791_v49, %v793_v50  ;;  %v339_v53 = vadd.s32 1, %v794_v51  ;;  %v337_v2 = vadd.s32 %v793_v50, %v791_v49  ;;  %v280_v31 = vsel %vm279_vm11, 0.0012574334, %v731_v30 }
  0x2c   : > { %v340_v54 = vsel %vm338_vm5, %v339_v53, %v794_v51 }
  0x2d   : > { %v341_v55 = vadd.s32 %v340_v54, %v336_v52 }
  0x2f   : > { %v342_v56 = vadd.s32 536870912, %v341_v55 }
  0x31   : > { %v343_v57 = vshrl.u32 %v342_v56, 30 }
  0x33   : > { %v344_v58 = vshll.u32 %v343_v57, 30  ;;  %v367_v16 = vsub.s32 4, %v343_v57 }
  0x35   : > { %v345_v59 = vsub.s32 %v341_v55, %v344_v58  ;;  %v368_v19 = vsel %vm283_vm7, %v367_v16, %v343_v57 }
  0x36   : > { %v370_v21 = vsel %vm282_vm8, 0, %v368_v19 }
  0x37   : > { %v347_v60 = vsub.s32 0, %v345_v59  ;;  %v481_v22 = vadd.s32 3, %v370_v21  ;;  %v374_v23 = vand.u32 3, %v370_v21 }
  0x39   : > { %v653_v61 = vmin.u32 %v347_v60, %v345_v59  ;;  %v482_v24 = vand.u32 3, %v481_v22  ;;  %vm379_vm9 = vcmp.eq.s32.totalorder %v374_v23, 2  ;;  %vm376_vm12 = vcmp.eq.s32.totalorder %v374_v23, 0 }
  0x3a   : > { %vm375_vm14 = vcmp.lt.s32.totalorder %v374_v23, 2 }
  0x3b   : > { %v349_v62 = vclz %v653_v61  ;;  %vm487_vm10 = vcmp.eq.s32.totalorder %v482_v24, 2  ;;  %vm484_vm13 = vcmp.eq.s32.totalorder %v482_v24, 0  ;;  %vm483_vm15 = vcmp.lt.s32.totalorder %v482_v24, 2 }
  0x3d   : > { %v654_v63 = vadd.s32 4294967294, %v349_v62 }
  0x3f   : > { %vm655_vm6 = vcmp.lt.s32.totalorder %v654_v63, 0 }
  0x40   : > { %v352_v3 = vsel %vm655_vm6, 0, %v654_v63 }
  0x41   : > { %v353_v5 = vsub.s32 32, %v352_v3  ;;  %v354_v6 = vshll.u32 %v345_v59, %v352_v3  ;;  %v357_v7 = vsub.s32 4294967266, %v352_v3 }
  0x43   : > { %v355_v8 = vshrl.u32 %v337_v2, %v353_v5  ;;  %v358_v9 = vadd.s32 127, %v357_v7 }
  0x45   : > { %v356_v10 = vor.u32 %v355_v8, %v354_v6  ;;  %v359_v11 = vshll.u32 %v358_v9, 23 }
  0x47   : > { %v360_v12 = vor.u32 4788187, %v359_v11  ;;  %v363_v13 = vcvt.s32.f32 %v356_v10 }
  0x49   : > { %v361_v14 = vand.u32 2147483647, %v360_v12 }
  0x4b   : > { %v364_v15 = vmul.f32 %v363_v13, %v361_v14 }
  0x4d   : > { %v365_v17 = vxor.u32 2147483648, %v364_v15 }
  0x4f   : > { %v366_v18 = vsel %vm283_vm7, %v365_v17, %v364_v15 }
  0x50   : > { %v369_v20 = vsel %vm282_vm8, %v784_v1, %v366_v18 }
  0x51   : > { %697 = vcosq.f32 %v369_v20 }
  0x52   : > { %699 = vsinq.f32 %v369_v20 }
  0x5e   : > { %v698_v25 = vpop.eup %697 }
  0x5f   : > { %v700_v26 = vpop.eup %699  ;;  %v380_v27 = vxor.u32 2147483648, %v698_v25 }
  0x60   : > { %v377_v4 = vxor.u32 2147483648, %v700_v26 }
  0x61   : > { %v381_v28 = vsel %vm379_vm9, %v380_v27, %v700_v26  ;;  %v489_v29 = vsel %vm487_vm10, %v380_v27, %v700_v26 }
  0x62   : > { %v378_v32 = vsel %vm376_vm12, %v698_v25, %v377_v4  ;;  %v486_v33 = vsel %vm484_vm13, %v698_v25, %v377_v4 }
  0x63   : > { %v382_v34 = vsel %vm375_vm14, %v378_v32, %v381_v28  ;;  %v490_v35 = vsel %vm483_vm15, %v486_v33, %v489_v29 }
  0x64   : > { %v383_v36 = vsel %vm373_vm0, nan, %v382_v34  ;;  %v491_v37 = vsel %vm373_vm0, nan, %v490_v35 }
  0x65   : > { %v384_v1 = vmul.f32 %v383_v36, %v280_v31  ;;  %v492_v39 = vmul.f32 %v491_v37, %v280_v31 }
  0x67   : > { %v386_v40 = vadd.f32 %v385_v0, %v384_v1  ;;  %v494_v41 = vadd.f32 %v493_v38, %v492_v39 }
  0x69   : > { %387 = vst [vmem:[%s269_s29] sm:$0xff] %v386_v40  ;;  %495 = vst [vmem:[%s276_s6] sm:$0xff] %v494_v41 }
  0x6a PF: > { %s15_s17 = sadd.s32 1, %s723_s17   ;;  %s834_s15 = smov %s719_s16 }
  0x6b   : > { %p12_p5 = scmp.ge.s32.totalorder %s15_s17, 4   ;;  %s835_s16 = smov %s837_s18 }
  0x6d   :  { %14 = sbr.rel (!%p12_p5) target bundleno = 2 (0x2), region = 80 }

</bundles_post_ra>
